<compile_context>
chip_gen: v7x
topology: tpu7x:2x2x1
jax: 0.10.0
libtpu: 0.0.40
codegen_flags: <defaults>
</compile_context>

<pallas_src>
import functools

import jax
import jax.numpy as jnp
from jax.experimental import pallas as pl
from jax.experimental.pallas import tpu as pltpu


def _round_up(x, m):
    return ((x + m - 1) // m) * m


def _sublane_tile(dtype):
    # 32-bit dtypes tile sublanes in 8s; 16-bit in 16s; 8-bit in 32s.
    itemsize = jnp.dtype(dtype).itemsize
    return 8 * max(1, 4 // itemsize)


def _tpu_budgets():
    """Returns (footprint_budget, vmem_limit_bytes, multi_tc).

    footprint_budget: allowed total double-buffered VMEM footprint per step.
    multi_tc: True when the chip has 2 TensorCores (v7x heuristic: 64 MiB VMEM),
    in which case we keep >=2 parallel grid iterations.
    """
    try:
        capacity = int(pltpu.get_tpu_info().vmem_capacity_bytes)
    except Exception:
        capacity = 64 << 20  # conservative fallback: safe on every generation
    footprint_budget = min(capacity // 2, 64 << 20)   # v5e/v6e: 64 MiB, v7x: 32 MiB
    vmem_limit = min(capacity * 3 // 4, 100 << 20)    # v5e/v6e: ~96 MiB, v7x: 48 MiB
    multi_tc = capacity <= (64 << 20)
    return footprint_budget, vmem_limit, multi_tc


def _cross_attn_matrix_kernel(x_ref, y_ref, o_ref, *, scale):
    # x_ref: (B, c, hw_block)   y_ref: (B, c, hw2)   o_ref: (B, 1, hw_block)
    xb = x_ref[...].astype(jnp.float32)
    yb = y_ref[...].astype(jnp.float32)

    # mean_j(M @ N^T) == M @ (sum_j N) * (1/hw2):
    #   1) lane-reduce y over its token axis -> (B, c, 1)              (XLU)
    #   2) contract over c via broadcast-multiply + sublane reduce (VPU/XLU);
    #      c is tiny, so the MXU would be <2% utilized — skip it.
    y_sum = jnp.sum(yb, axis=-1, keepdims=True)           # (B, c, 1)
    g = jnp.sum(xb * y_sum, axis=1, keepdims=True)        # (B, 1, hw_block), lane-dense

    # fold the 1/hw2 mean and the 1/(h*w*c) divisor into a single scale
    o_ref[...] = (g * scale).astype(o_ref.dtype)


def cross_attention_matrix(x, y, batch_block=None, hw_block=None):
    """x: (n, c, h, w), y: (n, c, h2, w2) -> (n, h, w) float32."""
    n, c, h, w = x.shape
    n2, c2, h2, w2 = y.shape
    assert n == n2 and c == c2

    hw = h * w
    hw2 = h2 * w2

    # NCHW -> (n, c, h*w): pure reshape, no transpose / extra HBM pass.
    xm = x.reshape(n, c, hw)
    ym = y.reshape(n, c, hw2)

    footprint_budget, vmem_limit, multi_tc = _tpu_budgets()

    # Padding-aware per-batch VMEM bytes: c on sublanes (padded to the dtype
    # tile), hw/hw2 on lanes (padded to 128); the f32 output's size-1 middle
    # dim pads to 8 sublanes.
    lane = 128
    bytes_x = (_round_up(c, _sublane_tile(x.dtype))
               * _round_up(hw, lane) * x.dtype.itemsize)
    bytes_y = (_round_up(c, _sublane_tile(y.dtype))
               * _round_up(hw2, lane) * y.dtype.itemsize)
    bytes_o = 8 * _round_up(hw, lane) * 4
    bytes_per_batch = bytes_x + bytes_y + bytes_o

    if batch_block is None:
        # Largest block whose double-buffered footprint fits the budget.
        batch_block = max(1, min(n, footprint_budget // (2 * bytes_per_batch)))
        # v7x only: keep >=2 grid iterations so both TensorCores have work.
        if multi_tc and n >= 2:
            batch_block = min(batch_block, pl.cdiv(n, 2))
    batch_block = max(1, min(batch_block, n))
    nb = pl.cdiv(n, batch_block)          # ragged last batch block is fine

    # If the batch axis alone cannot feed 2 TensorCores (v7x, tiny n), split
    # hw into a second parallel axis; y's block index is constant over it, so
    # y is DMA'd only once per batch block.
    if hw_block is None:
        if multi_tc and nb < 2 and hw >= 2 * lane:
            hw_block = _round_up(pl.cdiv(hw, 2), lane)
        else:
            hw_block = hw
    nj = pl.cdiv(hw, hw_block)

    scale = 1.0 / float(hw2 * h * w * c)

    cost = pl.CostEstimate(
        flops=2 * n * c * (hw + hw2),
        transcendentals=0,
        bytes_accessed=(n * c * (hw * x.dtype.itemsize + hw2 * y.dtype.itemsize)
                        + n * hw * 4),
    )

    out = pl.pallas_call(
        functools.partial(_cross_attn_matrix_kernel, scale=scale),
        out_shape=jax.ShapeDtypeStruct((n, 1, hw), jnp.float32),
        grid_spec=pltpu.PrefetchScalarGridSpec(
            num_scalar_prefetch=0,
            grid=(nb, nj),
            in_specs=[
                pl.BlockSpec((batch_block, c, hw_block), lambda b, j: (b, 0, j)),
                pl.BlockSpec((batch_block, c, hw2), lambda b, j: (b, 0, 0)),
            ],
            out_specs=pl.BlockSpec((batch_block, 1, hw_block), lambda b, j: (b, 0, j)),
        ),
        compiler_params=pltpu.CompilerParams(
            dimension_semantics=("parallel", "parallel"),
            vmem_limit_bytes=int(vmem_limit),
        ),
        cost_estimate=cost,
    )(xm, ym)

    # (n, 1, hw) -> (n, h, w): free reshape in plain JAX (keeps the in-kernel
    # store lane-dense instead of masked w-wide stores).
    return out.reshape(n, h, w)


def _reference(x, y):
    n, c, h, w = x.shape
    M = jnp.transpose(x, (0, 2, 3, 1)).reshape(n, h * w, c)
    N = jnp.transpose(y, (0, 2, 3, 1)).reshape(y.shape[0], -1, c)
    G = jnp.einsum('bid,bjd->bij', M, N)
    G = G.mean(-1).reshape(n, h, w)
    return G / (h * w * c)


if __name__ == "__main__":
    key = jax.random.PRNGKey(0)
    kx, ky = jax.random.split(key)

    # Small shapes consistent with the forward: both inputs are NCHW.
    n, c, h, w = 2, 4, 16, 16
    h2, w2 = 16, 16
    x = jax.random.normal(kx, (n, c, h, w), dtype=jnp.float32)
    y = jax.random.normal(ky, (n, c, h2, w2), dtype=jnp.float32)

    out = cross_attention_matrix(x, y)
    out = jax.block_until_ready(out)

    ref = _reference(x, y)
    assert out.shape == (n, h, w)
    assert jnp.allclose(out, ref, atol=1e-5, rtol=1e-4)
    print("KERNEL_OK")
</pallas_src>

<mosaic_0001>
module attributes {stable_mosaic.version = 11 : i64} {
  func.func @_cross_attn_matrix_kernel(%arg0: i32, %arg1: i32, %arg2: memref<1x4x256xf32, #tpu.memory_space<vmem>>, %arg3: memref<1x4x256xf32, #tpu.memory_space<vmem>>, %arg4: memref<1x1x256xf32, #tpu.memory_space<vmem>>) attributes {dimension_semantics = [#tpu.dimension_semantics<parallel>, #tpu.dimension_semantics<parallel>], iteration_bounds = array<i64: 2, 1>, scalar_prefetch = 0 : i64, scratch_operands = 0 : i64, tpu.core_type = #tpu.core_type<tc>, window_params = [{transform_indices = @transform_0, window_bounds = array<i64: 1, 4, 256>}, {transform_indices = @transform_1, window_bounds = array<i64: 1, 4, 256>}, {transform_indices = @transform_2, window_bounds = array<i64: 1, 1, 256>}]} {
    %c0 = arith.constant 0 : index
    %c0_0 = arith.constant 0 : index
    %c0_1 = arith.constant 0 : index
    %0 = vector.load %arg2[%c0, %c0_0, %c0_1] : memref<1x4x256xf32, #tpu.memory_space<vmem>>, vector<1x4x256xf32>
    %c0_2 = arith.constant 0 : index
    %c0_3 = arith.constant 0 : index
    %c0_4 = arith.constant 0 : index
    %1 = vector.load %arg3[%c0_2, %c0_3, %c0_4] : memref<1x4x256xf32, #tpu.memory_space<vmem>>, vector<1x4x256xf32>
    %cst = arith.constant dense<0.000000e+00> : vector<1x4xf32>
    %2 = vector.multi_reduction <add>, %1, %cst [2] : vector<1x4x256xf32> to vector<1x4xf32>
    %3 = vector.shape_cast %2 : vector<1x4xf32> to vector<1x4x1xf32>
    %4 = vector.broadcast %3 : vector<1x4x1xf32> to vector<1x4x256xf32>
    %5 = arith.mulf %0, %4 : vector<1x4x256xf32>
    %cst_5 = arith.constant dense<0.000000e+00> : vector<1x256xf32>
    %6 = vector.multi_reduction <add>, %5, %cst_5 [1] : vector<1x4x256xf32> to vector<1x256xf32>
    %7 = vector.shape_cast %6 : vector<1x256xf32> to vector<1x1x256xf32>
    %cst_6 = arith.constant 3.81469727E-6 : f32
    %8 = vector.broadcast %cst_6 : f32 to vector<1x1x256xf32>
    %9 = arith.mulf %7, %8 : vector<1x1x256xf32>
    %c0_7 = arith.constant 0 : index
    %c0_8 = arith.constant 0 : index
    %c0_9 = arith.constant 0 : index
    %10 = vector.load %arg4[%c0_7, %c0_8, %c0_9] : memref<1x1x256xf32, #tpu.memory_space<vmem>>, vector<1x1x256xf32>
    tpu.vector_store %arg4[%c0_7, %c0_8, %c0_9], %9 {strides = array<i32>} : memref<1x1x256xf32, #tpu.memory_space<vmem>>, vector<1x1x256xf32>,
    return
  }
  func.func @transform_0(%arg0: i32, %arg1: i32) -> (i32, i32, i32) {
    %c0_i32 = arith.constant 0 : i32
    %c0_i32_0 = arith.constant 0 : i32
    return %arg0, %c0_i32, %arg1 : i32, i32, i32
  }
  func.func @transform_1(%arg0: i32, %arg1: i32) -> (i32, i32, i32) {
    %c0_i32 = arith.constant 0 : i32
    %c0_i32_0 = arith.constant 0 : i32
    %c0_i32_1 = arith.constant 0 : i32
    return %arg0, %c0_i32, %c0_i32_0 : i32, i32, i32
  }
  func.func @transform_2(%arg0: i32, %arg1: i32) -> (i32, i32, i32) {
    %c0_i32 = arith.constant 0 : i32
    %c0_i32_0 = arith.constant 0 : i32
    return %arg0, %c0_i32, %arg1 : i32, i32, i32
  }
}

</mosaic_0001>

<bundles_post_ra>
// kernel: tpu_custom_call.1
= control target key start
LH: loop header
LB: loop body
LE: loop exit
PB: predicated region body
PF: predicated region fallthrough
CT: control target
= control target key end

     0   :  { %7 = vsyncpa [#allocation3], 0  ;;  %s890_s0 = inlined_call_operand.hbm [shape: f32[2,4,256], index: 0, kind: input, shape index: {}]   ;;  %s891_s1 = inlined_call_operand.hbm [shape: f32[2,4,256], index: 1, kind: input, shape index: {}]   ;;  %s892_s2 = inlined_call_operand.hbm [shape: f32[2,1,256], index: 2, kind: output, shape index: {}]  }
   0x1   :  { %9 = vsyncpa [#allocation3 + $0x1], 0 }
   0x2   :  { %10 = vsyncpa [#allocation6], 0 }
   0x3   :  { %12 = vsyncpa [#allocation6 + $0x1], 0 }
   0x4   :  { %13 = vsyncpa [#allocation4], 0 }
   0x5   :  { %15 = vsyncpa [#allocation4 + $0x1], 0  ;;  %s665_s9 = smov 0   ;;  %s667_s10 = smov 0  }
   0x6   :  { %s669_s11 = smov 0   ;;  %s671_s12 = smov 0  }
   0x7   :  { %s673_s13 = smov 0   ;;  %s675_s14 = smov 0  }
   0x8 LB: > { %s405_s15 = sadd.s32 4294967295, %s643_s14   ;;  %s406_s16 = sadd.s32 4294967294, %s643_s14   ;;  %s643_s14 = sphi %s675_s14, %s21_s14   ;;  %s639_s13 = sphi %s673_s13, %s912_s13   ;;  %s635_s12 = sphi %s671_s12, %s911_s12   ;;  %s631_s11 = sphi %s669_s11, %s910_s11   ;;  %s627_s10 = sphi %s667_s10, %s909_s10   ;;  %s623_s9 = sphi %s665_s9, %s908_s9  }
   0x9   : > { %s33_s17 = sadd.s32 1, %s639_s13  ;;  %s42_s18 = sadd.s32 1, %s631_s11 }
   0xa   : > { %p35_p0 = scmp.ge.s32.totalorder %s33_s17, 2  ;;  %p49_p1 = scmp.ne.s32.totalorder %s631_s11, %s627_s10 }
   0xb   : > { %p50_p2 = scmp.eq.s32.totalorder %s643_s14, 0  ;;  %p55_p3 = scmp.ne.s32.totalorder %s627_s10, %s623_s9 }
   0xc   : > { %s914_s17 = smov (%p35_p0, %s33_s17), 0  ;;  %p56_p5 = scmp.eq.s32.totalorder %s405_s15, 0 }
   0xd   : > { %p706_p4 = por %p50_p2, %p49_p1  ;;  %s37_s20 = ssub.s32 %s639_s13, %s914_s17 }
   0xe   : > { %p107_p6 = scmp.eq.s32.totalorder %s405_s15, 1  ;;  %p40_p7 = scmp.eq.s32.totalorder %s37_s20, 0 }
   0xf   : > { %p712_p8 = por %p56_p5, %p55_p3  ;;  %p113_p10 = scmp.eq.s32.totalorder %s406_s16, 1 }
  0x10   : > { %p716_p9 = por %p107_p6, %p49_p1  ;;  %p444_p13 = scmp.lt.s32.totalorder %s643_s14, 2 }
  0x11   : > { %s896_s21 = scalar_select %p712_p8, 1, 0 }
  0x12   : > { %s897_s22 = scalar_select %p716_p9, 1, 0 }
  0x13   : > { %s721_s23 = scalar_select %p40_p7, %s631_s11, %s42_s18  }
  0x14   : > { %p723_p11 = por %p113_p10, %p55_p3  ;;  %s730_s25 = sand.u32 1, %s631_s11  }
  0x15   : > { %s409_s26 = sshll.u32 %s730_s25, 3  ;;  %s424_s27 = sshll.u32 %s639_s13, 7 }
  0x16   : > { %s898_s24 = scalar_select %p723_p11, 1, 0 }
  0x17   : > { %s739_s30 = scalar_lea.hbm %s890_s0, %s424_s27  ;;  %s137_s3 = scalar_lea.vmem [#allocation2], %s409_s26 }
  0x18   : > { %s147_s4 = sshll.u32 %s137_s3, 4  ;;  %p747_p0 = pnand %p444_p13, %p706_p4  ;;  %s743_s4 = int_to_ptr.vmem [resolvable:$true] %s147_s4 }
  0x19   : > { %s134_s6 = scalar_lea.sflag [#allocation3], %s730_s25  ;;  %s497_s7 = scalar_lea.hbm %s739_s30, 128 }
  0x1a   : > { %p498_p3 = scmp.ne.s32.totalorder %s739_s30, %s497_s7  ;;  %p499_p5 = pneg %p747_p0 }
  0x1b   : > { %s502_s16 = scalar_lea.hbm %s890_s0, 256  ;;  %p503_p4 = scmp.lt.u32.totalorder %s739_s30, %s890_s0 }
  0x1c   : > { %p500_p6 = pnand %p499_p5, %p498_p3  ;;  %p504_p10 = scmp.lt.u32.totalorder %s502_s16, %s497_s7 }
  0x1d   : > { %p506_p12 = scmp.lt.u32.totalorder %s497_s7, %s739_s30 }
  0x1e   : > { %p501_p7 = pneg %p500_p6  ;;  %p505_p13 = por %p504_p10, %p503_p4 }
  0x20   : > { %p507_p1 = por %p506_p12, %p505_p13 }
  0x22   : > { %p508_p2 = pnand %p507_p1, %p501_p7 }
  0x24   : > { %511 = shalt.err (!%p508_p2)
}
  0x25   : > { %s512_s20 = scalar_lea.vmem %s743_s4, 128  ;;  %s645_s28 = smov [#allocation2]  }
  0x26   : > { %p513_p3 = scmp.ne.s32.totalorder %s743_s4, %s512_s20  ;;  %s517_s29 = sshll.u32 %s645_s28, 4  ;;  %s518_s29 = int_to_ptr.vmem [resolvable:$false] %s517_s29 }
  0x27   : > { %s519_s3 = scalar_lea.vmem %s518_s29, 256  ;;  %p520_p9 = scmp.lt.s32.totalorder %s743_s4, %s518_s29 }
  0x28   : > { %p515_p6 = pnand %p513_p3, %p499_p5  ;;  %p521_p4 = scmp.lt.s32.totalorder %s519_s3, %s512_s20 }
  0x2a   : > { %p516_p11 = pneg %p515_p6  ;;  %p522_p10 = por %p521_p4, %p520_p9 }
  0x2c   : > { %p523_p12 = pnand %p522_p10, %p516_p11 }
  0x2e   : > { %526 = shalt.err (!%p523_p12)
}
  0x2f   : > { %436 = dma.hbm_to_vmem [thread:$0]  (!%p747_p0), %s739_s30, 128, %s743_s4, %s134_s6  }
  0x30   : > { %p900_p1 = scmp.lt.s32.totalorder %s643_s14, 3  ;;  %p901_p2 = scmp.ge.s32.totalorder %s643_s14, 1 }
  0x31   : > { %s792_s16 = scalar_lea.hbm %s891_s1, %s424_s27  ;;  %s158_s18 = scalar_lea.vmem [#allocation5], %s409_s26 }
  0x32   : > { %p783_p7 = pnand %p901_p2, %p900_p1  ;;  %s166_s19 = sshll.u32 %s158_s18, 4  ;;  %s167_s19 = int_to_ptr.vmem [resolvable:$true] %s166_s19 }
  0x33   : > { %s155_s30 = scalar_lea.sflag [#allocation6], %s730_s25  ;;  %s527_s4 = scalar_lea.hbm %s792_s16, 128 }
  0x34   : > { %s902_s7 = scalar_select %p783_p7, 1, 0 }
  0x35   : > { %p528_p9 = scmp.ne.s32.totalorder %s792_s16, %s527_s4  ;;  %s532_s27 = scalar_lea.hbm %s891_s1, 256 }
  0x36   : > { %p533_p3 = scmp.lt.u32.totalorder %s792_s16, %s891_s1  ;;  %p534_p6 = scmp.lt.u32.totalorder %s532_s27, %s527_s4 }
  0x37   : > { %p530_p11 = pnand %p528_p9, %p499_p5  ;;  %p536_p10 = scmp.lt.u32.totalorder %s527_s4, %s792_s16 }
  0x38   : > { %p535_p4 = por %p534_p6, %p533_p3 }
  0x39   : > { %p531_p13 = pneg %p530_p11 }
  0x3a   : > { %p537_p12 = por %p536_p10, %p535_p4 }
  0x3c   : > { %p538_p1 = pnand %p537_p12, %p531_p13 }
  0x3e   : > { %541 = shalt.err (!%p538_p1)
}
  0x3f   : > { %s542_s25 = scalar_lea.vmem %s167_s19, 128  ;;  %s646_s26 = smov [#allocation5]  }
  0x40   : > { %p543_p2 = scmp.ne.s32.totalorder %s167_s19, %s542_s25  ;;  %s547_s3 = sshll.u32 %s646_s26, 4  ;;  %s548_s3 = int_to_ptr.vmem [resolvable:$false] %s547_s3 }
  0x41   : > { %s549_s8 = scalar_lea.vmem %s548_s3, 256  ;;  %p550_p8 = scmp.lt.s32.totalorder %s167_s19, %s548_s3 }
  0x42   : > { %p545_p9 = pnand %p543_p2, %p499_p5  ;;  %p551_p7 = scmp.lt.s32.totalorder %s549_s8, %s542_s25 }
  0x44   : > { %p546_p11 = pneg %p545_p9  ;;  %p552_p3 = por %p551_p7, %p550_p8 }
  0x46   : > { %p553_p6 = pnand %p552_p3, %p546_p11 }
  0x48   : > { %556 = shalt.err (!%p553_p6)
}
  0x49   : > { %439 = dma.hbm_to_vmem [thread:$0]  (!%p747_p0), %s792_s16, 128, %s167_s19, %s155_s30  }
  0x4a   : > { %p903_p13 = scmp.ne.s32.totalorder %s902_s7, 0 }
  0x4b   : > { %s819_s15 = sand.u32 (!%p903_p13), 1, %s627_s10   ;;  %p904_p5 = scmp.ne.s32.totalorder (!%p903_p13), %s896_s21, 0 }
  0x4c   : > { %175 = sbr.rel (%p903_p13) target bundleno = 275 (0x113), region = 28  ;;  %s416_s18 = sshll.u32 (!%p903_p13), %s819_s15, 3 }
  0x4d   : > { %s178_s4 = scalar_lea.sflag (!%p903_p13), [#allocation3], %s819_s15  ;;  %s181_s6 = scalar_lea.vmem (!%p903_p13), [#allocation2], %s416_s18 }
  0x53   : > { %610 = dma.done.wait (%p904_p5), %s178_s4, 128  }
  0x54   : > { %612 = vsyncadd (%p904_p5), %s178_s4, 4294967168  ;;  %s187_s5 = scalar_lea.sflag [#allocation6], %s819_s15  ;;  %s190_s16 = scalar_lea.vmem [#allocation5], %s416_s18 }
  0x55   : > { %614 = dma.done.wait (%p904_p5), %s187_s5, 128  }
  0x56   : > { %616 = vsyncadd (%p904_p5), %s187_s5, 4294967168  ;;  %vm223_vm0 = vcmask 1043456   ;;  %v219_v0 = vld [vmem:[%s190_s16] sm:$0xff]  ;;  %v647_v5 = vmov 839922192   ;;  %v233_v7 = vlaneseq  ;;  %v218_v11 = vld [vmem:[%s181_s6] sm:$0xff] }
  0x57   : > { %v221_v1 = vcombine.high %v219_v0, %v219_v0  ;;  %v224_v2 = vsel %vm223_vm0, %v219_v0, 0.0  ;;  %v231_v6 = vunpack.c.l.s4 %v647_v5  ;;  %v648_v25 = vmov 1966171168   ;;  %s418_s21 = sshll.u32 %s819_s15, 1  ;;  %s426_s7 = sshll.u32 %s635_s12, 5 }
  0x58   : > { %v234_v9 = vshrl.u32 %v233_v7, 7  ;;  %v262_v26 = vunpack.c.l.s4 %v648_v25  ;;  %s215_s19 = scalar_lea.vmem [#allocation7], %s418_s21  ;;  %vm278_vm1 = vcmp.lt.s32.totalorder %v233_v7, 256  ;;  %s841_s28 = scalar_lea.hbm %s892_s2, %s426_s7 }
  0x59   : > { %v225_v3 = vsel %vm223_vm0, %v221_v1, 0.0  ;;  %v232_v8 = vunpack.c.0.s8 %v231_v6  ;;  %s298_s30 = sshll.u32 %s215_s19, 4  ;;  %s282_s29 = scalar_lea.sflag [#allocation4], %s819_s15  ;;  %s843_s30 = int_to_ptr.vmem [resolvable:$true] %s298_s30 }
  0x5a   : > { %v226_v4 = vadd.f32 %v225_v3, %v224_v2  ;;  %v263_v31 = vunpack.c.0.s8 %v262_v26  ;;  %s557_s25 = scalar_lea.vmem %s843_s30, 32  ;;  %p905_p0 = scmp.ne.s32.totalorder %s897_s22, 0 }
  0x5b   : > { %v235_v10 = vsub.s32 %v232_v8, %v234_v9  ;;  %p558_p8 = scmp.ne.s32.totalorder %s843_s30, %s557_s25  ;;  %s649_s12 = smov [#allocation7]  }
  0x5c   : > { %227 = vadd.xlane.f32.xlu0 %v226_v4  ;;  %v266_v35 = vsub.s32 %v263_v31, %v234_v9  ;;  %s561_s26 = sshll.u32 %s649_s12, 4  ;;  %s562_s26 = int_to_ptr.vmem [resolvable:$false] %s561_s26 }
  0x5d   : > { %p559_p7 = pnand %p558_p8, %p905_p0  ;;  %s563_s3 = scalar_lea.vmem %s562_s26, 64 }
  0x5e   : > { %p564_p10 = scmp.lt.s32.totalorder %s843_s30, %s562_s26  ;;  %p565_p12 = scmp.lt.s32.totalorder %s563_s3, %s557_s25 }
  0x5f   : > { %p560_p4 = pneg %p559_p7 }
  0x60   : > { %p566_p1 = por %p565_p12, %p564_p10 }
  0x62   : > { %p567_p2 = pnand %p566_p1, %p560_p4 }
  0xe9   : > { %v228_v12 = vpop.xlane.xlu0 %227 }
  0xea   : > { %v236_v13 = vrot.slane %v228_v12, %v235_v10 }
  0xec   : > { %v238_v14 = vmul.f32 %v236_v13, %v218_v11 }
  0xee   : > { %v240_v15 = vcombine.high %v238_v14, %v238_v14  ;;  %v242_v16 = vsel %vm223_vm0, %v238_v14, 0.0 }
  0xef   : > { %v243_v17 = vrot.slane %v242_v16, 4 }
  0xf0   : > { %v249_v18 = vsel %vm223_vm0, %v240_v15, 0.0 }
  0xf1   : > { %v244_v19 = vadd.f32 %v243_v17, %v242_v16  ;;  %v250_v20 = vrot.slane %v249_v18, 4 }
  0xf3   : > { %v245_v21 = vrot.slane %v244_v19, 2  ;;  %v251_v22 = vadd.f32 %v250_v20, %v249_v18 }
  0xf5   : > { %v246_v23 = vadd.f32 %v245_v21, %v244_v19  ;;  %v252_v24 = vrot.slane %v251_v22, 2 }
  0xf7   : > { %v247_v27 = vrot.slane %v246_v23, 1  ;;  %v253_v28 = vadd.f32 %v252_v24, %v251_v22 }
  0xf9   : > { %v248_v29 = vadd.f32 %v247_v27, %v246_v23  ;;  %v254_v30 = vrot.slane %v253_v28, 1 }
  0xfb   : > { %v255_v32 = vadd.f32 %v254_v30, %v253_v28  ;;  %v256_v33 = vmul.f32 3.8146973e-06, %v248_v29 }
  0xfd   : > { %v257_v34 = vmul.f32 3.8146973e-06, %v255_v32 }
  0xff   : > { %v260_v36 = vcombine.low %v256_v33, %v257_v34 }
 0x101   : > { %v267_v37 = vrot.slane %v260_v36, %v266_v35 }
 0x103   : > { %v274_v38 = vrot.slane %v267_v37, %v266_v35 }
 0x105   : > { %280 = vst.msk [vmem:[%s215_s19] sm:$0x3] %vm278_vm1, %v274_v38 }
 0x106   : > { %570 = shalt.err (!%p567_p2)
}
 0x107   : > { %s571_s8 = scalar_lea.hbm %s841_s28, 32  ;;  %s575_s4 = scalar_lea.hbm %s892_s2, 64 }
 0x108   : > { %p572_p9 = scmp.ne.s32.totalorder %s841_s28, %s571_s8  ;;  %p576_p6 = scmp.lt.u32.totalorder %s841_s28, %s892_s2 }
 0x109   : > { %p577_p13 = scmp.lt.u32.totalorder %s575_s4, %s571_s8  ;;  %p579_p8 = scmp.lt.u32.totalorder %s571_s8, %s841_s28 }
 0x10a   : > { %p573_p11 = pnand %p572_p9, %p905_p0 }
 0x10b   : > { %p578_p5 = por %p577_p13, %p576_p6 }
 0x10c   : > { %p574_p3 = pneg %p573_p11 }
 0x10d   : > { %p580_p7 = por %p579_p8, %p578_p5 }
 0x10f   : > { %p581_p4 = pnand %p580_p7, %p574_p3 }
 0x111   : > { %584 = shalt.err (!%p581_p4)
}
 0x112   : > { %431 = dma.vmem_to_hbm [thread:$0]  (%p905_p0), %s843_s30, 32, %s841_s28, %s282_s29  }
 0x113 PF: > { %s310_s16 = sand.u32 1, %s623_s9   ;;  %p906_p10 = scmp.ne.s32.totalorder %s898_s24, 0 }
 0x114   : > { %p907_p12 = scmp.ge.s32.totalorder %s643_s14, 2  ;;  %s311_s21 = scalar_lea.sflag [#allocation4], %s310_s16 }
 0x116   : > { %p441_p1 = pnand %p907_p12, %p906_p10 }
 0x118   : > { %618 = dma.done.wait (!%p441_p1), %s311_s21, 32  }
 0x119   : > { %620 = vsyncadd (!%p441_p1), %s311_s21, 4294967264  ;;  %s21_s14 = sadd.s32 1, %s643_s14   ;;  %s908_s9 = smov %s627_s10 }
 0x11a   : > { %p18_p2 = scmp.ge.s32.totalorder %s21_s14, 4   ;;  %s909_s10 = smov %s631_s11 }
 0x11b   : > { %s910_s11 = smov %s721_s23  ;;  %s911_s12 = smov %s639_s13 }
 0x11c   : > { %s912_s13 = smov %s914_s17  ;;  %20 = sbr.rel (!%p18_p2) target bundleno = 8 (0x8), region = 86 }
 0x123   :  { %316 = vsyncpa [#allocation3], 1 }
 0x124   :  { %318 = vsyncpa [#allocation3 + $0x1], 1 }
 0x125   :  { %319 = vsyncpa [#allocation6], 1 }
 0x126   :  { %321 = vsyncpa [#allocation6 + $0x1], 1 }
 0x127   :  { %322 = vsyncpa [#allocation4], 1 }
 0x128   :  { %324 = vsyncpa [#allocation4 + $0x1], 1 }

</bundles_post_ra>
